<compile_context>
chip_gen: v5e
topology: v5e:2x2
jax: 0.10.0
libtpu: 0.0.40
codegen_flags: <defaults>
</compile_context>

<pallas_src>
import jax
import jax.numpy as jnp
import numpy as np
from jax.experimental import pallas as pl
from jax.experimental.pallas import tpu as pltpu


# ----------------------------- Pallas kernels ------------------------------ #

def conv_block_kernel(patches_ref, w_ref, b_ref, scale_ref, shift_ref, o_ref):
    """Fused conv (single (TM, 9*Cin)x(9*Cin, Cout) matmul) + bias + LeakyReLU + BN affine.

    patches_ref: (TM, 9*Cin)  bf16 im2col patch rows for this M-tile
    w_ref:       (9*Cin, Cout) bf16 fused conv weights
    b_ref:       (1, Cout)     f32 conv bias
    scale_ref:   (1, Cout)     f32 folded BN scale (ones when bn=False)
    shift_ref:   (1, Cout)     f32 folded BN shift (zeros when bn=False)
    o_ref:       (TM, Cout)    f32
    """
    acc = jnp.dot(patches_ref[...], w_ref[...], preferred_element_type=jnp.float32)
    acc = acc + b_ref[...]
    # LeakyReLU(0.2)
    y = jnp.where(acc > 0, acc, 0.2 * acc)
    # Dropout2d(0.25): identity in eval mode.
    # TODO(synk): training-mode stochastic channel dropout not reproduced here.
    # BatchNorm2d (eval): folded per-channel affine.
    o_ref[...] = y * scale_ref[...] + shift_ref[...]


def head_kernel(x_ref, w_ref, b_ref, o_ref):
    """Linear(F, 1) + Sigmoid (tiny: kept in fp32)."""
    logits = jnp.dot(x_ref[...], w_ref[...], preferred_element_type=jnp.float32) + b_ref[...]
    o_ref[...] = jax.nn.sigmoid(logits)


# ------------------------------ JAX glue code ------------------------------ #

_VMEM_FULL = pl.BlockSpec(memory_space=pltpu.MemorySpace.VMEM)


def _round_up(x, m):
    return (x + m - 1) // m * m


def _im2col_fused(x, ksize=3, stride=2, pad=1):
    """x: (N, H, W, C) -> patches (N*OH*OW, ksize*ksize*C), tap-major / channel-minor.

    TODO(synk): this still materializes the 9x-duplicated patch tensor in HBM;
    forming taps in-kernel from the padded input (strided refs) would remove
    that round trip.
    """
    N, H, W, C = x.shape
    xp = jnp.pad(x, ((0, 0), (pad, pad), (pad, pad), (0, 0)))
    OH = (H + 2 * pad - ksize) // stride + 1
    OW = (W + 2 * pad - ksize) // stride + 1
    cols = []
    for kh in range(ksize):
        for kw in range(ksize):
            patch = xp[:, kh:kh + stride * OH:stride, kw:kw + stride * OW:stride, :]
            cols.append(patch.reshape(N * OH * OW, C))
    return jnp.concatenate(cols, axis=-1), OH, OW


def conv_block(x, p, tm=512):
    """x: (N, H, W, Cin) NHWC f32 -> (N, OH, OW, Cout) f32."""
    N, H, W, Cin = x.shape
    Cout = p["w"].shape[0]

    # bf16 matmul operands (fp32 accumulation inside the kernel).
    patches, OH, OW = _im2col_fused(x.astype(jnp.bfloat16))      # (M, 9*Cin) bf16
    K9 = 9 * Cin
    # PyTorch weight (Cout, Cin, KH, KW) -> (KH, KW, Cin, Cout) -> (9*Cin, Cout)
    wk = jnp.transpose(p["w"], (2, 3, 1, 0)).reshape(K9, Cout).astype(jnp.bfloat16)

    M = N * OH * OW
    # Tile over M. TM=512 keeps per-step VMEM well under v7x's budget;
    # could be swept upward on v5e/v6e (128 MiB VMEM).
    tm_eff = min(tm, _round_up(M, 8))
    Mp = _round_up(M, tm_eff)
    if Mp != M:
        patches = jnp.pad(patches, ((0, Mp - M), (0, 0)))

    out = pl.pallas_call(
        conv_block_kernel,
        out_shape=jax.ShapeDtypeStruct((Mp, Cout), jnp.float32),
        grid_spec=pltpu.PrefetchScalarGridSpec(
            num_scalar_prefetch=0,
            grid=(Mp // tm_eff,),
            in_specs=[
                pl.BlockSpec((tm_eff, K9), lambda i: (i, 0)),   # patches tile
                pl.BlockSpec((K9, Cout), lambda i: (0, 0)),     # weights (resident)
                pl.BlockSpec((1, Cout), lambda i: (0, 0)),      # bias
                pl.BlockSpec((1, Cout), lambda i: (0, 0)),      # BN scale
                pl.BlockSpec((1, Cout), lambda i: (0, 0)),      # BN shift
            ],
            out_specs=pl.BlockSpec((tm_eff, Cout), lambda i: (i, 0)),
        ),
        compiler_params=pltpu.CompilerParams(
            dimension_semantics=("parallel",)),
    )(
        patches,
        wk,
        p["b"].reshape(1, Cout).astype(jnp.float32),
        p["scale"].reshape(1, Cout).astype(jnp.float32),
        p["shift"].reshape(1, Cout).astype(jnp.float32),
    )
    return out[:M].reshape(N, OH, OW, Cout)


def adv_head(flat, lin_w_nhwc, lin_b):
    N, F = flat.shape
    return pl.pallas_call(
        head_kernel,
        out_shape=jax.ShapeDtypeStruct((N, 1), jnp.float32),
        in_specs=[_VMEM_FULL] * 3,
        out_specs=_VMEM_FULL,
    )(flat, lin_w_nhwc, lin_b.reshape(1, 1))


def discriminator_forward(img_nchw, params, lin_w, lin_b):
    # Accept NCHW (PyTorch convention) -> NHWC internally.
    x = jnp.transpose(img_nchw, (0, 2, 3, 1))
    for p in params:
        x = conv_block(x, p)
    N, dh, dw, C = x.shape
    # torch's out.view(N, -1) flattens NCHW; instead of transposing the activation,
    # fold that permutation into the linear weight's row order (free).
    lin_w_nhwc = lin_w.reshape(C, dh, dw, 1).transpose(1, 2, 0, 3).reshape(dh * dw * C, 1)
    flat = x.reshape(N, dh * dw * C)
    return adv_head(flat, lin_w_nhwc, lin_b)


discriminator_forward_jit = jax.jit(discriminator_forward)


# ------------------------- Deterministic parameters ------------------------ #

def init_params(key, in_channels, img_size):
    chans = [in_channels, 16, 32, 64, 128]
    params = []
    eps = 0.8  # nn.BatchNorm2d(out_filters, 0.8): second positional arg is eps
    for i in range(4):
        cin, cout = chans[i], chans[i + 1]
        key, k1, k2, k3, k4, k5, k6 = jax.random.split(key, 7)
        w = 0.05 * jax.random.normal(k1, (cout, cin, 3, 3), jnp.float32)
        b = 0.05 * jax.random.normal(k2, (cout,), jnp.float32)
        if i == 0:  # bn=False block
            scale = jnp.ones((cout,), jnp.float32)
            shift = jnp.zeros((cout,), jnp.float32)
        else:       # eval-mode BatchNorm folded into scale/shift
            gamma = 1.0 + 0.1 * jax.random.normal(k3, (cout,), jnp.float32)
            beta = 0.1 * jax.random.normal(k4, (cout,), jnp.float32)
            rmean = 0.1 * jax.random.normal(k5, (cout,), jnp.float32)
            rvar = 1.0 + 0.1 * jax.random.uniform(k6, (cout,), jnp.float32)
            scale = gamma / jnp.sqrt(rvar + eps)
            shift = beta - rmean * scale
        params.append(dict(w=w, b=b, scale=scale, shift=shift))

    ds = img_size // 2 ** 4
    key, k1, k2 = jax.random.split(key, 3)
    lin_w = 0.05 * jax.random.normal(k1, (128 * ds * ds, 1), jnp.float32)
    lin_b = 0.05 * jax.random.normal(k2, (1,), jnp.float32)
    return params, lin_w, lin_b


# ------------------------------ Pure-JAX check ------------------------------ #

def reference_forward(img_nchw, params, lin_w, lin_b):
    """Matches the Pallas path's precision policy: bf16 matmul operands, f32 accum."""
    x = jnp.transpose(img_nchw, (0, 2, 3, 1))
    for p in params:
        k = jnp.transpose(p["w"], (2, 3, 1, 0)).astype(jnp.bfloat16)  # HWIO
        y = jax.lax.conv_general_dilated(
            x.astype(jnp.bfloat16), k, window_strides=(2, 2), padding=((1, 1), (1, 1)),
            dimension_numbers=("NHWC", "HWIO", "NHWC"),
            preferred_element_type=jnp.float32)
        y = y + p["b"]
        y = jnp.where(y > 0, y, 0.2 * y)
        x = y * p["scale"] + p["shift"]
    # Original torch flatten order (NCHW) with the original lin_w.
    flat = jnp.transpose(x, (0, 3, 1, 2)).reshape(x.shape[0], -1)
    return jax.nn.sigmoid(flat @ lin_w + lin_b)


# ----------------------------------- main ----------------------------------- #

if __name__ == "__main__":
    key = jax.random.PRNGKey(0)
    batch, channels, img_size = 2, 3, 16  # opt.channels=3, opt.img_size=16

    key, kx = jax.random.split(key)
    img = jax.random.normal(kx, (batch, channels, img_size, img_size), jnp.float32)

    params, lin_w, lin_b = init_params(key, channels, img_size)

    validity = discriminator_forward_jit(img, params, lin_w, lin_b)
    validity = jax.block_until_ready(validity)

    ref = jax.block_until_ready(reference_forward(img, params, lin_w, lin_b))

    assert validity.shape == (batch, 1), validity.shape
    np.testing.assert_allclose(np.asarray(validity), np.asarray(ref),
                               rtol=2e-3, atol=2e-3)
    print("KERNEL_OK")
</pallas_src>

<mosaic_0001>
module attributes {stable_mosaic.version = 11 : i64} {
  func.func @conv_block_kernel(%arg0: i32, %arg1: memref<128x27xbf16, #tpu.memory_space<vmem>>, %arg2: memref<27x16xbf16, #tpu.memory_space<vmem>>, %arg3: memref<1x16xf32, #tpu.memory_space<vmem>>, %arg4: memref<1x16xf32, #tpu.memory_space<vmem>>, %arg5: memref<1x16xf32, #tpu.memory_space<vmem>>, %arg6: memref<128x16xf32, #tpu.memory_space<vmem>>) attributes {dimension_semantics = [#tpu.dimension_semantics<parallel>], iteration_bounds = array<i64: 1>, scalar_prefetch = 0 : i64, scratch_operands = 0 : i64, tpu.core_type = #tpu.core_type<tc>, window_params = [{transform_indices = @transform_0, window_bounds = array<i64: 128, 27>}, {pipeline_mode = #tpu.pipeline_mode<synchronous>, transform_indices = @transform_1, window_bounds = array<i64: 27, 16>}, {pipeline_mode = #tpu.pipeline_mode<synchronous>, transform_indices = @transform_2, window_bounds = array<i64: 1, 16>}, {pipeline_mode = #tpu.pipeline_mode<synchronous>, transform_indices = @transform_3, window_bounds = array<i64: 1, 16>}, {pipeline_mode = #tpu.pipeline_mode<synchronous>, transform_indices = @transform_4, window_bounds = array<i64: 1, 16>}, {transform_indices = @transform_5, window_bounds = array<i64: 128, 16>}]} {
    %c0 = arith.constant 0 : index
    %c0_0 = arith.constant 0 : index
    %0 = vector.load %arg1[%c0, %c0_0] : memref<128x27xbf16, #tpu.memory_space<vmem>>, vector<128x27xbf16>
    %c0_1 = arith.constant 0 : index
    %c0_2 = arith.constant 0 : index
    %1 = vector.load %arg2[%c0_1, %c0_2] : memref<27x16xbf16, #tpu.memory_space<vmem>>, vector<27x16xbf16>
    %cst = arith.constant dense<0.000000e+00> : vector<128x16xf32>
    %2 = tpu.matmul %0, %1, %cst {dimension_numbers = #tpu.dot_dimension_numbers<[1], [0], [0], [1], [0, 0, 1, 1], [], []>} : vector<128x27xbf16>, vector<27x16xbf16>, vector<128x16xf32> -> vector<128x16xf32>
    %c0_3 = arith.constant 0 : index
    %c0_4 = arith.constant 0 : index
    %3 = vector.load %arg3[%c0_3, %c0_4] : memref<1x16xf32, #tpu.memory_space<vmem>>, vector<1x16xf32>
    %4 = vector.broadcast %3 : vector<1x16xf32> to vector<128x16xf32>
    %5 = arith.addf %2, %4 : vector<128x16xf32>
    %cst_5 = arith.constant 0.000000e+00 : f32
    %6 = vector.broadcast %cst_5 : f32 to vector<128x16xf32>
    %7 = arith.cmpf ogt, %5, %6 : vector<128x16xf32>
    %cst_6 = arith.constant 2.000000e-01 : f32
    %8 = vector.broadcast %cst_6 : f32 to vector<128x16xf32>
    %9 = arith.mulf %8, %5 : vector<128x16xf32>
    %10 = arith.select %7, %5, %9 : vector<128x16xi1>, vector<128x16xf32>
    %c0_7 = arith.constant 0 : index
    %c0_8 = arith.constant 0 : index
    %11 = vector.load %arg4[%c0_7, %c0_8] : memref<1x16xf32, #tpu.memory_space<vmem>>, vector<1x16xf32>
    %12 = vector.broadcast %11 : vector<1x16xf32> to vector<128x16xf32>
    %13 = arith.mulf %10, %12 : vector<128x16xf32>
    %c0_9 = arith.constant 0 : index
    %c0_10 = arith.constant 0 : index
    %14 = vector.load %arg5[%c0_9, %c0_10] : memref<1x16xf32, #tpu.memory_space<vmem>>, vector<1x16xf32>
    %15 = vector.broadcast %14 : vector<1x16xf32> to vector<128x16xf32>
    %16 = arith.addf %13, %15 : vector<128x16xf32>
    %c0_11 = arith.constant 0 : index
    %c0_12 = arith.constant 0 : index
    %17 = vector.load %arg6[%c0_11, %c0_12] : memref<128x16xf32, #tpu.memory_space<vmem>>, vector<128x16xf32>
    tpu.vector_store %arg6[%c0_11, %c0_12], %16 {strides = array<i32>} : memref<128x16xf32, #tpu.memory_space<vmem>>, vector<128x16xf32>,
    return
  }
  func.func @transform_0(%arg0: i32) -> (i32, i32) {
    %c0_i32 = arith.constant 0 : i32
    %c0_i32_0 = arith.constant 0 : i32
    return %arg0, %c0_i32 : i32, i32
  }
  func.func @transform_1(%arg0: i32) -> (i32, i32) {
    %c0_i32 = arith.constant 0 : i32
    %c0_i32_0 = arith.constant 0 : i32
    %c0_i32_1 = arith.constant 0 : i32
    return %c0_i32, %c0_i32_0 : i32, i32
  }
  func.func @transform_2(%arg0: i32) -> (i32, i32) {
    %c0_i32 = arith.constant 0 : i32
    %c0_i32_0 = arith.constant 0 : i32
    %c0_i32_1 = arith.constant 0 : i32
    return %c0_i32, %c0_i32_0 : i32, i32
  }
  func.func @transform_3(%arg0: i32) -> (i32, i32) {
    %c0_i32 = arith.constant 0 : i32
    %c0_i32_0 = arith.constant 0 : i32
    %c0_i32_1 = arith.constant 0 : i32
    return %c0_i32, %c0_i32_0 : i32, i32
  }
  func.func @transform_4(%arg0: i32) -> (i32, i32) {
    %c0_i32 = arith.constant 0 : i32
    %c0_i32_0 = arith.constant 0 : i32
    %c0_i32_1 = arith.constant 0 : i32
    return %c0_i32, %c0_i32_0 : i32, i32
  }
  func.func @transform_5(%arg0: i32) -> (i32, i32) {
    %c0_i32 = arith.constant 0 : i32
    %c0_i32_0 = arith.constant 0 : i32
    return %arg0, %c0_i32 : i32, i32
  }
}

module attributes {stable_mosaic.version = 11 : i64} {
  func.func @conv_block_kernel(%arg0: i32, %arg1: memref<32x144xbf16, #tpu.memory_space<vmem>>, %arg2: memref<144x32xbf16, #tpu.memory_space<vmem>>, %arg3: memref<1x32xf32, #tpu.memory_space<vmem>>, %arg4: memref<1x32xf32, #tpu.memory_space<vmem>>, %arg5: memref<1x32xf32, #tpu.memory_space<vmem>>, %arg6: memref<32x32xf32, #tpu.memory_space<vmem>>) attributes {dimension_semantics = [#tpu.dimension_semantics<parallel>], iteration_bounds = array<i64: 1>, scalar_prefetch = 0 : i64, scratch_operands = 0 : i64, tpu.core_type = #tpu.core_type<tc>, window_params = [{transform_indices = @transform_0, window_bounds = array<i64: 32, 144>}, {pipeline_mode = #tpu.pipeline_mode<synchronous>, transform_indices = @transform_1, window_bounds = array<i64: 144, 32>}, {pipeline_mode = #tpu.pipeline_mode<synchronous>, transform_indices = @transform_2, window_bounds = array<i64: 1, 32>}, {pipeline_mode = #tpu.pipeline_mode<synchronous>, transform_indices = @transform_3, window_bounds = array<i64: 1, 32>}, {pipeline_mode = #tpu.pipeline_mode<synchronous>, transform_indices = @transform_4, window_bounds = array<i64: 1, 32>}, {transform_indices = @transform_5, window_bounds = array<i64: 32, 32>}]} {
    %c0 = arith.constant 0 : index
    %c0_0 = arith.constant 0 : index
    %0 = vector.load %arg1[%c0, %c0_0] : memref<32x144xbf16, #tpu.memory_space<vmem>>, vector<32x144xbf16>
    %c0_1 = arith.constant 0 : index
    %c0_2 = arith.constant 0 : index
    %1 = vector.load %arg2[%c0_1, %c0_2] : memref<144x32xbf16, #tpu.memory_space<vmem>>, vector<144x32xbf16>
    %cst = arith.constant dense<0.000000e+00> : vector<32x32xf32>
    %2 = tpu.matmul %0, %1, %cst {dimension_numbers = #tpu.dot_dimension_numbers<[1], [0], [0], [1], [0, 0, 1, 1], [], []>} : vector<32x144xbf16>, vector<144x32xbf16>, vector<32x32xf32> -> vector<32x32xf32>
    %c0_3 = arith.constant 0 : index
    %c0_4 = arith.constant 0 : index
    %3 = vector.load %arg3[%c0_3, %c0_4] : memref<1x32xf32, #tpu.memory_space<vmem>>, vector<1x32xf32>
    %4 = vector.broadcast %3 : vector<1x32xf32> to vector<32x32xf32>
    %5 = arith.addf %2, %4 : vector<32x32xf32>
    %cst_5 = arith.constant 0.000000e+00 : f32
    %6 = vector.broadcast %cst_5 : f32 to vector<32x32xf32>
    %7 = arith.cmpf ogt, %5, %6 : vector<32x32xf32>
    %cst_6 = arith.constant 2.000000e-01 : f32
    %8 = vector.broadcast %cst_6 : f32 to vector<32x32xf32>
    %9 = arith.mulf %8, %5 : vector<32x32xf32>
    %10 = arith.select %7, %5, %9 : vector<32x32xi1>, vector<32x32xf32>
    %c0_7 = arith.constant 0 : index
    %c0_8 = arith.constant 0 : index
    %11 = vector.load %arg4[%c0_7, %c0_8] : memref<1x32xf32, #tpu.memory_space<vmem>>, vector<1x32xf32>
    %12 = vector.broadcast %11 : vector<1x32xf32> to vector<32x32xf32>
    %13 = arith.mulf %10, %12 : vector<32x32xf32>
    %c0_9 = arith.constant 0 : index
    %c0_10 = arith.constant 0 : index
    %14 = vector.load %arg5[%c0_9, %c0_10] : memref<1x32xf32, #tpu.memory_space<vmem>>, vector<1x32xf32>
    %15 = vector.broadcast %14 : vector<1x32xf32> to vector<32x32xf32>
    %16 = arith.addf %13, %15 : vector<32x32xf32>
    %c0_11 = arith.constant 0 : index
    %c0_12 = arith.constant 0 : index
    %17 = vector.load %arg6[%c0_11, %c0_12] : memref<32x32xf32, #tpu.memory_space<vmem>>, vector<32x32xf32>
    tpu.vector_store %arg6[%c0_11, %c0_12], %16 {strides = array<i32>} : memref<32x32xf32, #tpu.memory_space<vmem>>, vector<32x32xf32>,
    return
  }
  func.func @transform_0(%arg0: i32) -> (i32, i32) {
    %c0_i32 = arith.constant 0 : i32
    %c0_i32_0 = arith.constant 0 : i32
    return %arg0, %c0_i32 : i32, i32
  }
  func.func @transform_1(%arg0: i32) -> (i32, i32) {
    %c0_i32 = arith.constant 0 : i32
    %c0_i32_0 = arith.constant 0 : i32
    %c0_i32_1 = arith.constant 0 : i32
    return %c0_i32, %c0_i32_0 : i32, i32
  }
  func.func @transform_2(%arg0: i32) -> (i32, i32) {
    %c0_i32 = arith.constant 0 : i32
    %c0_i32_0 = arith.constant 0 : i32
    %c0_i32_1 = arith.constant 0 : i32
    return %c0_i32, %c0_i32_0 : i32, i32
  }
  func.func @transform_3(%arg0: i32) -> (i32, i32) {
    %c0_i32 = arith.constant 0 : i32
    %c0_i32_0 = arith.constant 0 : i32
    %c0_i32_1 = arith.constant 0 : i32
    return %c0_i32, %c0_i32_0 : i32, i32
  }
  func.func @transform_4(%arg0: i32) -> (i32, i32) {
    %c0_i32 = arith.constant 0 : i32
    %c0_i32_0 = arith.constant 0 : i32
    %c0_i32_1 = arith.constant 0 : i32
    return %c0_i32, %c0_i32_0 : i32, i32
  }
  func.func @transform_5(%arg0: i32) -> (i32, i32) {
    %c0_i32 = arith.constant 0 : i32
    %c0_i32_0 = arith.constant 0 : i32
    return %arg0, %c0_i32 : i32, i32
  }
}

module attributes {stable_mosaic.version = 11 : i64} {
  func.func @conv_block_kernel(%arg0: i32, %arg1: memref<8x288xbf16, #tpu.memory_space<vmem>>, %arg2: memref<288x64xbf16, #tpu.memory_space<vmem>>, %arg3: memref<1x64xf32, #tpu.memory_space<vmem>>, %arg4: memref<1x64xf32, #tpu.memory_space<vmem>>, %arg5: memref<1x64xf32, #tpu.memory_space<vmem>>, %arg6: memref<8x64xf32, #tpu.memory_space<vmem>>) attributes {dimension_semantics = [#tpu.dimension_semantics<parallel>], iteration_bounds = array<i64: 1>, scalar_prefetch = 0 : i64, scratch_operands = 0 : i64, tpu.core_type = #tpu.core_type<tc>, window_params = [{transform_indices = @transform_0, window_bounds = array<i64: 8, 288>}, {pipeline_mode = #tpu.pipeline_mode<synchronous>, transform_indices = @transform_1, window_bounds = array<i64: 288, 64>}, {pipeline_mode = #tpu.pipeline_mode<synchronous>, transform_indices = @transform_2, window_bounds = array<i64: 1, 64>}, {pipeline_mode = #tpu.pipeline_mode<synchronous>, transform_indices = @transform_3, window_bounds = array<i64: 1, 64>}, {pipeline_mode = #tpu.pipeline_mode<synchronous>, transform_indices = @transform_4, window_bounds = array<i64: 1, 64>}, {transform_indices = @transform_5, window_bounds = array<i64: 8, 64>}]} {
    %c0 = arith.constant 0 : index
    %c0_0 = arith.constant 0 : index
    %0 = vector.load %arg1[%c0, %c0_0] : memref<8x288xbf16, #tpu.memory_space<vmem>>, vector<8x288xbf16>
    %c0_1 = arith.constant 0 : index
    %c0_2 = arith.constant 0 : index
    %1 = vector.load %arg2[%c0_1, %c0_2] : memref<288x64xbf16, #tpu.memory_space<vmem>>, vector<288x64xbf16>
    %cst = arith.constant dense<0.000000e+00> : vector<8x64xf32>
    %2 = tpu.matmul %0, %1, %cst {dimension_numbers = #tpu.dot_dimension_numbers<[1], [0], [0], [1], [0, 0, 1, 1], [], []>} : vector<8x288xbf16>, vector<288x64xbf16>, vector<8x64xf32> -> vector<8x64xf32>
    %c0_3 = arith.constant 0 : index
    %c0_4 = arith.constant 0 : index
    %3 = vector.load %arg3[%c0_3, %c0_4] : memref<1x64xf32, #tpu.memory_space<vmem>>, vector<1x64xf32>
    %4 = vector.broadcast %3 : vector<1x64xf32> to vector<8x64xf32>
    %5 = arith.addf %2, %4 : vector<8x64xf32>
    %cst_5 = arith.constant 0.000000e+00 : f32
    %6 = vector.broadcast %cst_5 : f32 to vector<8x64xf32>
    %7 = arith.cmpf ogt, %5, %6 : vector<8x64xf32>
    %cst_6 = arith.constant 2.000000e-01 : f32
    %8 = vector.broadcast %cst_6 : f32 to vector<8x64xf32>
    %9 = arith.mulf %8, %5 : vector<8x64xf32>
    %10 = arith.select %7, %5, %9 : vector<8x64xi1>, vector<8x64xf32>
    %c0_7 = arith.constant 0 : index
    %c0_8 = arith.constant 0 : index
    %11 = vector.load %arg4[%c0_7, %c0_8] : memref<1x64xf32, #tpu.memory_space<vmem>>, vector<1x64xf32>
    %12 = vector.broadcast %11 : vector<1x64xf32> to vector<8x64xf32>
    %13 = arith.mulf %10, %12 : vector<8x64xf32>
    %c0_9 = arith.constant 0 : index
    %c0_10 = arith.constant 0 : index
    %14 = vector.load %arg5[%c0_9, %c0_10] : memref<1x64xf32, #tpu.memory_space<vmem>>, vector<1x64xf32>
    %15 = vector.broadcast %14 : vector<1x64xf32> to vector<8x64xf32>
    %16 = arith.addf %13, %15 : vector<8x64xf32>
    %c0_11 = arith.constant 0 : index
    %c0_12 = arith.constant 0 : index
    %17 = vector.load %arg6[%c0_11, %c0_12] : memref<8x64xf32, #tpu.memory_space<vmem>>, vector<8x64xf32>
    tpu.vector_store %arg6[%c0_11, %c0_12], %16 {strides = array<i32>} : memref<8x64xf32, #tpu.memory_space<vmem>>, vector<8x64xf32>,
    return
  }
  func.func @transform_0(%arg0: i32) -> (i32, i32) {
    %c0_i32 = arith.constant 0 : i32
    %c0_i32_0 = arith.constant 0 : i32
    return %arg0, %c0_i32 : i32, i32
  }
  func.func @transform_1(%arg0: i32) -> (i32, i32) {
    %c0_i32 = arith.constant 0 : i32
    %c0_i32_0 = arith.constant 0 : i32
    %c0_i32_1 = arith.constant 0 : i32
    return %c0_i32, %c0_i32_0 : i32, i32
  }
  func.func @transform_2(%arg0: i32) -> (i32, i32) {
    %c0_i32 = arith.constant 0 : i32
    %c0_i32_0 = arith.constant 0 : i32
    %c0_i32_1 = arith.constant 0 : i32
    return %c0_i32, %c0_i32_0 : i32, i32
  }
  func.func @transform_3(%arg0: i32) -> (i32, i32) {
    %c0_i32 = arith.constant 0 : i32
    %c0_i32_0 = arith.constant 0 : i32
    %c0_i32_1 = arith.constant 0 : i32
    return %c0_i32, %c0_i32_0 : i32, i32
  }
  func.func @transform_4(%arg0: i32) -> (i32, i32) {
    %c0_i32 = arith.constant 0 : i32
    %c0_i32_0 = arith.constant 0 : i32
    %c0_i32_1 = arith.constant 0 : i32
    return %c0_i32, %c0_i32_0 : i32, i32
  }
  func.func @transform_5(%arg0: i32) -> (i32, i32) {
    %c0_i32 = arith.constant 0 : i32
    %c0_i32_0 = arith.constant 0 : i32
    return %arg0, %c0_i32 : i32, i32
  }
}

module attributes {stable_mosaic.version = 11 : i64} {
  func.func @conv_block_kernel(%arg0: i32, %arg1: memref<8x576xbf16, #tpu.memory_space<vmem>>, %arg2: memref<576x128xbf16, #tpu.memory_space<vmem>>, %arg3: memref<1x128xf32, #tpu.memory_space<vmem>>, %arg4: memref<1x128xf32, #tpu.memory_space<vmem>>, %arg5: memref<1x128xf32, #tpu.memory_space<vmem>>, %arg6: memref<8x128xf32, #tpu.memory_space<vmem>>) attributes {dimension_semantics = [#tpu.dimension_semantics<parallel>], iteration_bounds = array<i64: 1>, scalar_prefetch = 0 : i64, scratch_operands = 0 : i64, tpu.core_type = #tpu.core_type<tc>, window_params = [{transform_indices = @transform_0, window_bounds = array<i64: 8, 576>}, {pipeline_mode = #tpu.pipeline_mode<synchronous>, transform_indices = @transform_1, window_bounds = array<i64: 576, 128>}, {pipeline_mode = #tpu.pipeline_mode<synchronous>, transform_indices = @transform_2, window_bounds = array<i64: 1, 128>}, {pipeline_mode = #tpu.pipeline_mode<synchronous>, transform_indices = @transform_3, window_bounds = array<i64: 1, 128>}, {pipeline_mode = #tpu.pipeline_mode<synchronous>, transform_indices = @transform_4, window_bounds = array<i64: 1, 128>}, {transform_indices = @transform_5, window_bounds = array<i64: 8, 128>}]} {
    %c0 = arith.constant 0 : index
    %c0_0 = arith.constant 0 : index
    %0 = vector.load %arg1[%c0, %c0_0] : memref<8x576xbf16, #tpu.memory_space<vmem>>, vector<8x576xbf16>
    %c0_1 = arith.constant 0 : index
    %c0_2 = arith.constant 0 : index
    %1 = vector.load %arg2[%c0_1, %c0_2] : memref<576x128xbf16, #tpu.memory_space<vmem>>, vector<576x128xbf16>
    %cst = arith.constant dense<0.000000e+00> : vector<8x128xf32>
    %2 = tpu.matmul %0, %1, %cst {dimension_numbers = #tpu.dot_dimension_numbers<[1], [0], [0], [1], [0, 0, 1, 1], [], []>} : vector<8x576xbf16>, vector<576x128xbf16>, vector<8x128xf32> -> vector<8x128xf32>
    %c0_3 = arith.constant 0 : index
    %c0_4 = arith.constant 0 : index
    %3 = vector.load %arg3[%c0_3, %c0_4] : memref<1x128xf32, #tpu.memory_space<vmem>>, vector<1x128xf32>
    %4 = vector.broadcast %3 : vector<1x128xf32> to vector<8x128xf32>
    %5 = arith.addf %2, %4 : vector<8x128xf32>
    %cst_5 = arith.constant 0.000000e+00 : f32
    %6 = vector.broadcast %cst_5 : f32 to vector<8x128xf32>
    %7 = arith.cmpf ogt, %5, %6 : vector<8x128xf32>
    %cst_6 = arith.constant 2.000000e-01 : f32
    %8 = vector.broadcast %cst_6 : f32 to vector<8x128xf32>
    %9 = arith.mulf %8, %5 : vector<8x128xf32>
    %10 = arith.select %7, %5, %9 : vector<8x128xi1>, vector<8x128xf32>
    %c0_7 = arith.constant 0 : index
    %c0_8 = arith.constant 0 : index
    %11 = vector.load %arg4[%c0_7, %c0_8] : memref<1x128xf32, #tpu.memory_space<vmem>>, vector<1x128xf32>
    %12 = vector.broadcast %11 : vector<1x128xf32> to vector<8x128xf32>
    %13 = arith.mulf %10, %12 : vector<8x128xf32>
    %c0_9 = arith.constant 0 : index
    %c0_10 = arith.constant 0 : index
    %14 = vector.load %arg5[%c0_9, %c0_10] : memref<1x128xf32, #tpu.memory_space<vmem>>, vector<1x128xf32>
    %15 = vector.broadcast %14 : vector<1x128xf32> to vector<8x128xf32>
    %16 = arith.addf %13, %15 : vector<8x128xf32>
    %c0_11 = arith.constant 0 : index
    %c0_12 = arith.constant 0 : index
    %17 = vector.load %arg6[%c0_11, %c0_12] : memref<8x128xf32, #tpu.memory_space<vmem>>, vector<8x128xf32>
    tpu.vector_store %arg6[%c0_11, %c0_12], %16 {strides = array<i32>} : memref<8x128xf32, #tpu.memory_space<vmem>>, vector<8x128xf32>,
    return
  }
  func.func @transform_0(%arg0: i32) -> (i32, i32) {
    %c0_i32 = arith.constant 0 : i32
    %c0_i32_0 = arith.constant 0 : i32
    return %arg0, %c0_i32 : i32, i32
  }
  func.func @transform_1(%arg0: i32) -> (i32, i32) {
    %c0_i32 = arith.constant 0 : i32
    %c0_i32_0 = arith.constant 0 : i32
    %c0_i32_1 = arith.constant 0 : i32
    return %c0_i32, %c0_i32_0 : i32, i32
  }
  func.func @transform_2(%arg0: i32) -> (i32, i32) {
    %c0_i32 = arith.constant 0 : i32
    %c0_i32_0 = arith.constant 0 : i32
    %c0_i32_1 = arith.constant 0 : i32
    return %c0_i32, %c0_i32_0 : i32, i32
  }
  func.func @transform_3(%arg0: i32) -> (i32, i32) {
    %c0_i32 = arith.constant 0 : i32
    %c0_i32_0 = arith.constant 0 : i32
    %c0_i32_1 = arith.constant 0 : i32
    return %c0_i32, %c0_i32_0 : i32, i32
  }
  func.func @transform_4(%arg0: i32) -> (i32, i32) {
    %c0_i32 = arith.constant 0 : i32
    %c0_i32_0 = arith.constant 0 : i32
    %c0_i32_1 = arith.constant 0 : i32
    return %c0_i32, %c0_i32_0 : i32, i32
  }
  func.func @transform_5(%arg0: i32) -> (i32, i32) {
    %c0_i32 = arith.constant 0 : i32
    %c0_i32_0 = arith.constant 0 : i32
    return %arg0, %c0_i32 : i32, i32
  }
}

module attributes {stable_mosaic.version = 11 : i64} {
  func.func @head_kernel(%arg0: memref<2x128xf32, #tpu.memory_space<vmem>>, %arg1: memref<128x1xf32, #tpu.memory_space<vmem>>, %arg2: memref<1x1xf32, #tpu.memory_space<vmem>>, %arg3: memref<2x1xf32, #tpu.memory_space<vmem>>) attributes {dimension_semantics = [], scalar_prefetch = 0 : i64, scratch_operands = 0 : i64, tpu.core_type = #tpu.core_type<tc>} {
    %c0 = arith.constant 0 : index
    %c0_0 = arith.constant 0 : index
    %0 = vector.load %arg0[%c0, %c0_0] : memref<2x128xf32, #tpu.memory_space<vmem>>, vector<2x128xf32>
    %c0_1 = arith.constant 0 : index
    %c0_2 = arith.constant 0 : index
    %1 = vector.load %arg1[%c0_1, %c0_2] : memref<128x1xf32, #tpu.memory_space<vmem>>, vector<128x1xf32>
    %cst = arith.constant dense<0.000000e+00> : vector<2x1xf32>
    %2 = tpu.matmul %0, %1, %cst {dimension_numbers = #tpu.dot_dimension_numbers<[1], [0], [0], [1], [0, 0, 1, 1], [], []>} : vector<2x128xf32>, vector<128x1xf32>, vector<2x1xf32> -> vector<2x1xf32>
    %c0_3 = arith.constant 0 : index
    %c0_4 = arith.constant 0 : index
    %3 = vector.load %arg2[%c0_3, %c0_4] : memref<1x1xf32, #tpu.memory_space<vmem>>, vector<1x1xf32>
    %4 = vector.broadcast %3 : vector<1x1xf32> to vector<2x1xf32>
    %5 = arith.addf %2, %4 : vector<2x1xf32>
    %6 = arith.negf %5 : vector<2x1xf32>
    %7 = math.exp %6 : vector<2x1xf32>
    %cst_5 = arith.constant 1.000000e+00 : f32
    %8 = vector.broadcast %cst_5 : f32 to vector<2x1xf32>
    %9 = arith.addf %8, %7 : vector<2x1xf32>
    %10 = arith.divf %8, %9 : vector<2x1xf32>
    %c0_6 = arith.constant 0 : index
    %c0_7 = arith.constant 0 : index
    %11 = vector.load %arg3[%c0_6, %c0_7] : memref<2x1xf32, #tpu.memory_space<vmem>>, vector<2x1xf32>
    tpu.vector_store %arg3[%c0_6, %c0_7], %10 {strides = array<i32>} : memref<2x1xf32, #tpu.memory_space<vmem>>, vector<2x1xf32>,
    return
  }
}

</mosaic_0001>

<bundles_post_ra>
// kernel: discriminator_forward.6
= control target key start
LH: loop header
LB: loop body
LE: loop exit
PB: predicated region body
PF: predicated region fallthrough
CT: control target
= control target key end

     0   :  { %vm119_vm0 = vcmask 130048   ;;  %vm192_vm2 = vcmask 261120   ;;  %s387_s1 = inlined_call_operand.vmem [shape: bf16[144,32], index: 1, kind: input, shape index: {}]   ;;  %s388_s0 = inlined_call_operand.vmem [shape: bf16[32,144], index: 0, kind: input, shape index: {}]   ;;  %s389_s2 = inlined_call_operand.vmem [shape: f32[1,32], index: 2, kind: input, shape index: {}]   ;;  %s390_s3 = inlined_call_operand.vmem [shape: f32[1,32], index: 3, kind: input, shape index: {}]   ;;  %s391_s4 = inlined_call_operand.vmem [shape: f32[1,32], index: 4, kind: input, shape index: {}]   ;;  %s392_s5 = inlined_call_operand.vmem [shape: f32[32,32], index: 5, kind: output, shape index: {}]  }
   0x1   :  { %v266_v0 = vld [vmem:[%s387_s1 + $0x38] sm:$0xff]  ;;  %v267_v1 = vld [vmem:[%s387_s1 + $0x40] sm:$0xff]  ;;  %v265_v3 = vld [vmem:[%s387_s1 + $0x30] sm:$0xff] }
   0x2   :  { %v255_v2 = vld [vmem:[%s388_s0 + $0x4] sm:$0xf]  ;;  %126 = vmatpush.bf16.msra.mxu0 %v266_v0  ;;  %268 = vmatpush.bf16.msra.mxu2 %v266_v0  ;;  %v205_v4 = vld [vmem:[%s388_s0 + $0x8] sm:$0xf0]  ;;  %v262_v8 = vld [vmem:[%s387_s1 + $0x18] sm:$0xff] }
   0x3   :  { %152 = vmatpush.bf16.msra.mxu1 %v267_v1  ;;  %v208_v5 = vor.u32 %v255_v2, %v205_v4  ;;  %v264_v6 = vld [vmem:[%s387_s1 + $0x28] sm:$0xff]  ;;  %v263_v7 = vld [vmem:[%s387_s1 + $0x20] sm:$0xff]  ;;  %v257_v9 = vld [vmem:[%s388_s0 + $0x14] sm:$0xf] }
   0x4   :  { %v213_v10 = vld [vmem:[%s388_s0 + $0x18] sm:$0xf0]  ;;  %v261_v11 = vld [vmem:[%s387_s1 + $0x10] sm:$0xff]  ;;  %v260_v13 = vld [vmem:[%s387_s1 + $0x8] sm:$0xff] }
   0x5   :  { %v216_v12 = vor.u32 %v257_v9, %v213_v10  ;;  %v259_v14 = vld [vmem:[%s387_s1] sm:$0xff]  ;;  %v256_v16 = vld [vmem:[%s388_s0 + $0x4] sm:$0xf0]  ;;  %v211_v17 = vld [vmem:[%s388_s0 + $0x10] sm:$0xf] }
   0x6   :  { %127 = vmatpush.bf16.msra.mxu0 %v265_v3  ;;  %269 = vmatpush.bf16.msra.mxu2 %v265_v3  ;;  %v203_v15 = vld [vmem:[%s388_s0] sm:$0xf]  ;;  %v258_v18 = vld [vmem:[%s388_s0 + $0x14] sm:$0xf0] }
   0x7   :  { %253 = vmatmul.msk.bf16.vlgmr.msra.gmra.mxu1 %vm119_vm0, %v208_v5  ;;  %v204_v19 = vor.u32 %v256_v16, %v203_v15  ;;  %v212_v20 = vor.u32 %v258_v18, %v211_v17  ;;  %v276_v23 = vld [vmem:[%s389_s2] ss:$0 sm:$0xff] }
   0x8   :  { %v277_v27 = vld [vmem:[%s390_s3] ss:$0 sm:$0xff] }
   0x9   :  { %v278_v29 = vld [vmem:[%s391_s4] ss:$0 sm:$0xff] }
   0xa   :  { %128 = vmatpush.bf16.msra.mxu0 %v264_v6  ;;  %270 = vmatpush.bf16.msra.mxu2 %v264_v6 }
   0xe   :  { %129 = vmatpush.bf16.msra.mxu0 %v263_v7  ;;  %271 = vmatpush.bf16.msra.mxu2 %v263_v7 }
  0x12   :  { %130 = vmatpush.bf16.msra.mxu0 %v262_v8  ;;  %272 = vmatpush.bf16.msra.mxu2 %v262_v8 }
  0x16   :  { %131 = vmatpush.bf16.msra.mxu0 %v261_v11  ;;  %273 = vmatpush.bf16.msra.mxu2 %v261_v11 }
  0x17   :  { %254 = vmatmul.msk.bf16.gmra.mxu1 %vm119_vm0, %v216_v12 }
  0x1a   :  { %132 = vmatpush.bf16.msra.mxu0 %v260_v13  ;;  %274 = vmatpush.bf16.msra.mxu2 %v260_v13 }
  0x1e   :  { %133 = vmatpush.bf16.msra.mxu0 %v259_v14  ;;  %275 = vmatpush.bf16.msra.mxu2 %v259_v14 }
  0x21   :  { %134 = vmatmul.bf16.vlgmr.msra.gmra.mxu0 %v204_v19  ;;  %139 = vmatmul.bf16.vlgmr.msra.gmra.mxu2 %v212_v20 }
  0x84   :  { %v154_v21 = vpop.f32.mrf.mxu1 }
  0x8c   :  { %v156_v22 = vpop.f32.mrf.mxu1 }
  0x94   :  { %v159_v30 = vpop.f32.mrf.mxu1 }
  0x9c   :  { %v161_v49 = vpop.f32.mrf.mxu1 }
  0x9e   :  { %v135_v24 = vpop.f32.mrf.mxu0 }
  0x9f   :  { %v136_v25 = vadd.f32 %v276_v23, %v135_v24 }
  0xa1   :  { %v155_v26 = vadd.f32 %v154_v21, %v136_v25 }
  0xa3   :  { %vm164_vm1 = vcmp.gt.f32.partialorder %v155_v26, 0.0  ;;  %v168_v28 = vmul.f32 0.2, %v155_v26 }
  0xa4   :  { %v140_v31 = vpop.f32.mrf.mxu2 }
  0xa5   :  { %v172_v32 = vsel %vm164_vm1, %v155_v26, %v168_v28  ;;  %v141_v33 = vadd.f32 %v276_v23, %v140_v31 }
  0xa6   :  { %v180_v34 = vmul.f32 %v277_v27, %v172_v32  ;;  %v137_v35 = vpop.f32.mrf.mxu0 }
  0xa7   :  { %v160_v36 = vadd.f32 %v159_v30, %v141_v33  ;;  %v138_v37 = vadd.f32 %v276_v23, %v137_v35 }
  0xa8   :  { %v188_v38 = vadd.f32 %v278_v29, %v180_v34 }
  0xa9   :  { %vm166_vm3 = vcmp.gt.f32.partialorder %v160_v36, 0.0  ;;  %v170_v39 = vmul.f32 0.2, %v160_v36  ;;  %v157_v40 = vadd.f32 %v156_v22, %v138_v37 }
  0xaa   :  { %193 = vst.msk [vmem:[%s392_s5] sm:$0xff] %vm192_vm2, %v188_v38 }
  0xab   :  { %v174_v41 = vsel %vm166_vm3, %v160_v36, %v170_v39  ;;  %vm165_vm4 = vcmp.gt.f32.partialorder %v157_v40, 0.0  ;;  %v169_v42 = vmul.f32 0.2, %v157_v40 }
  0xac   :  { %v182_v43 = vmul.f32 %v277_v27, %v174_v41  ;;  %v142_v44 = vpop.f32.mrf.mxu2 }
  0xad   :  { %v173_v45 = vsel %vm165_vm4, %v157_v40, %v169_v42  ;;  %v143_v46 = vadd.f32 %v276_v23, %v142_v44 }
  0xae   :  { %v190_v47 = vadd.f32 %v278_v29, %v182_v43  ;;  %v181_v48 = vmul.f32 %v277_v27, %v173_v45 }
  0xaf   :  { %v162_v50 = vadd.f32 %v161_v49, %v143_v46 }
  0xb0   :  { %195 = vst.msk [vmem:[%s392_s5 + $0x10] sm:$0xff] %vm192_vm2, %v190_v47  ;;  %v189_v51 = vadd.f32 %v278_v29, %v181_v48 }
  0xb1   :  { %vm167_vm5 = vcmp.gt.f32.partialorder %v162_v50, 0.0  ;;  %v171_v52 = vmul.f32 0.2, %v162_v50 }
  0xb2   :  { %194 = vst.msk [vmem:[%s392_s5 + $0x8] sm:$0xff] %vm192_vm2, %v189_v51 }
  0xb3   :  { %v175_v53 = vsel %vm167_vm5, %v162_v50, %v171_v52 }
  0xb4   :  { %v183_v54 = vmul.f32 %v277_v27, %v175_v53 }
  0xb6   :  { %v191_v55 = vadd.f32 %v278_v29, %v183_v54 }
  0xb8   :  { %196 = vst.msk [vmem:[%s392_s5 + $0x18] sm:$0xff] %vm192_vm2, %v191_v55 }

// kernel: discriminator_forward.5
= control target key start
LH: loop header
LB: loop body
LE: loop exit
PB: predicated region body
PF: predicated region fallthrough
CT: control target
= control target key end

     0   :  { %vm121_vm0 = vcmask 1044480   ;;  %vm122_vm1 = vcmask 1045504   ;;  %v354_v2 = vmov 65535   ;;  %vm96_vm2 = vcmask 220160   ;;  %s553_s1 = inlined_call_operand.vmem [shape: bf16[27,16], index: 1, kind: input, shape index: {}]   ;;  %s554_s2 = inlined_call_operand.vmem [shape: f32[1,16], index: 2, kind: input, shape index: {}]   ;;  %s555_s3 = inlined_call_operand.vmem [shape: f32[1,16], index: 3, kind: input, shape index: {}]   ;;  %s556_s4 = inlined_call_operand.vmem [shape: f32[1,16], index: 4, kind: input, shape index: {}]   ;;  %s557_s0 = inlined_call_operand.vmem [shape: bf16[128,27], index: 0, kind: input, shape index: {}]   ;;  %s558_s5 = inlined_call_operand.vmem [shape: f32[128,16], index: 5, kind: output, shape index: {}]  }
   0x1   :  { %v324_v0 = vld [vmem:[%s553_s1 + $0x8] sm:$0xf]  ;;  %v343_v1 = vld [vmem:[%s553_s1 + $0x8] sm:$0x30]  ;;  %v123_v3 = vsel %vm121_vm0, 4294967295, %v354_v2  ;;  %v342_v7 = vld [vmem:[%s553_s1] sm:$0xff] }
   0x2   :  { %v325_v4 = vor.u32 %v343_v1, %v324_v0  ;;  %v124_v5 = vsel %vm122_vm1, %v123_v3, 0  ;;  %v334_v8 = vld [vmem:[%s557_s0] sm:$0xff]  ;;  %v336_v9 = vld [vmem:[%s557_s0 + $0x10] sm:$0xff]  ;;  %v335_v12 = vld [vmem:[%s557_s0 + $0x8] sm:$0xff]  ;;  %vm265_vm5 = vcmask 130048  }
   0x3   :  { %v338_v10 = vld [vmem:[%s557_s0 + $0x20] sm:$0xff]  ;;  %v340_v11 = vld [vmem:[%s557_s0 + $0x30] sm:$0xff]  ;;  %v337_v13 = vld [vmem:[%s557_s0 + $0x18] sm:$0xff] }
   0x4   :  { %v126_v6 = vand.u32 %v325_v4, %v124_v5  ;;  %v339_v14 = vld [vmem:[%s557_s0 + $0x28] sm:$0xff]  ;;  %v341_v15 = vld [vmem:[%s557_s0 + $0x38] sm:$0xff]  ;;  %v429_v16 = vld [vmem:[%s554_s2] ss:$0 sm:$0xff] }
   0x5   :  { %v436_v21 = vld [vmem:[%s555_s3] ss:$0 sm:$0xff] }
   0x6   :  { %134 = vmatpush.bf16.msra.mxu0 %v126_v6  ;;  %344 = vmatpush.bf16.msra.mxu1 %v126_v6  ;;  %v441_v24 = vld [vmem:[%s556_s4] ss:$0 sm:$0xff] }
   0x7   :  { %345 = vmatpush.bf16.msra.mxu2 %v126_v6  ;;  %346 = vmatpush.bf16.msra.mxu3 %v126_v6 }
   0xa   :  { %135 = vmatpush.bf16.msra.mxu0 %v342_v7  ;;  %347 = vmatpush.bf16.msra.mxu1 %v342_v7 }
   0xb   :  { %348 = vmatpush.bf16.msra.mxu2 %v342_v7  ;;  %349 = vmatpush.bf16.msra.mxu3 %v342_v7 }
   0xd   :  { %326 = vmatmul.msk.bf16.vlgmr.msra.gmra.mxu0 %vm96_vm2, %v334_v8  ;;  %328 = vmatmul.msk.bf16.vlgmr.msra.gmra.mxu1 %vm96_vm2, %v336_v9 }
   0xe   :  { %330 = vmatmul.msk.bf16.vlgmr.msra.gmra.mxu2 %vm96_vm2, %v338_v10  ;;  %332 = vmatmul.msk.bf16.vlgmr.msra.gmra.mxu3 %vm96_vm2, %v340_v11 }
  0x1d   :  { %327 = vmatmul.msk.bf16.gmra.mxu0 %vm96_vm2, %v335_v12  ;;  %329 = vmatmul.msk.bf16.gmra.mxu1 %vm96_vm2, %v337_v13 }
  0x1e   :  { %331 = vmatmul.msk.bf16.gmra.mxu2 %vm96_vm2, %v339_v14  ;;  %333 = vmatmul.msk.bf16.gmra.mxu3 %vm96_vm2, %v341_v15 }
  0x8a   :  { %v137_v17 = vpop.f32.mrf.mxu0  ;;  %v147_v18 = vpop.f32.mrf.mxu1 }
  0x8b   :  { %v138_v19 = vadd.f32 %v429_v16, %v137_v17  ;;  %v148_v20 = vadd.f32 %v429_v16, %v147_v18 }
  0x8d   :  { %vm177_vm3 = vcmp.gt.f32.partialorder %v138_v19, 0.0  ;;  %v193_v22 = vmul.f32 0.2, %v138_v19  ;;  %vm181_vm4 = vcmp.gt.f32.partialorder %v148_v20, 0.0  ;;  %v197_v23 = vmul.f32 0.2, %v148_v20 }
  0x8f   :  { %v209_v25 = vsel %vm177_vm3, %v138_v19, %v193_v22  ;;  %v213_v26 = vsel %vm181_vm4, %v148_v20, %v197_v23 }
  0x90   :  { %v229_v27 = vmul.f32 %v436_v21, %v209_v25  ;;  %v233_v28 = vmul.f32 %v436_v21, %v213_v26 }
  0x91   :  { %v157_v29 = vpop.f32.mrf.mxu2  ;;  %v167_v30 = vpop.f32.mrf.mxu3 }
  0x92   :  { %v249_v31 = vadd.f32 %v441_v24, %v229_v27  ;;  %v253_v32 = vadd.f32 %v441_v24, %v233_v28  ;;  %v158_v33 = vadd.f32 %v429_v16, %v157_v29  ;;  %v168_v34 = vadd.f32 %v429_v16, %v167_v30  ;;  %v139_v35 = vpop.f32.mrf.mxu0  ;;  %v149_v36 = vpop.f32.mrf.mxu1 }
  0x93   :  { %v140_v37 = vadd.f32 %v429_v16, %v139_v35  ;;  %v150_v38 = vadd.f32 %v429_v16, %v149_v36 }
  0x94   :  { %266 = vst.msk [vmem:[%s558_s5] sm:$0xff] %vm265_vm5, %v249_v31  ;;  %vm185_vm6 = vcmp.gt.f32.partialorder %v158_v33, 0.0  ;;  %v201_v39 = vmul.f32 0.2, %v158_v33  ;;  %vm189_vm7 = vcmp.gt.f32.partialorder %v168_v34, 0.0 }
  0x95   :  { %270 = vst.msk [vmem:[%s558_s5 + $0x20] sm:$0xff] %vm265_vm5, %v253_v32  ;;  %v205_v40 = vmul.f32 0.2, %v168_v34  ;;  %vm178_vm8 = vcmp.gt.f32.partialorder %v140_v37, 0.0  ;;  %v194_v41 = vmul.f32 0.2, %v140_v37 }
  0x96   :  { %v217_v42 = vsel %vm185_vm6, %v158_v33, %v201_v39  ;;  %vm182_vm9 = vcmp.gt.f32.partialorder %v150_v38, 0.0  ;;  %v198_v43 = vmul.f32 0.2, %v150_v38 }
  0x97   :  { %v237_v44 = vmul.f32 %v436_v21, %v217_v42  ;;  %v221_v45 = vsel %vm189_vm7, %v168_v34, %v205_v40  ;;  %v210_v46 = vsel %vm178_vm8, %v140_v37, %v194_v41 }
  0x98   :  { %v241_v47 = vmul.f32 %v436_v21, %v221_v45  ;;  %v230_v48 = vmul.f32 %v436_v21, %v210_v46  ;;  %v214_v49 = vsel %vm182_vm9, %v150_v38, %v198_v43 }
  0x99   :  { %v257_v50 = vadd.f32 %v441_v24, %v237_v44  ;;  %v234_v51 = vmul.f32 %v436_v21, %v214_v49  ;;  %v159_v52 = vpop.f32.mrf.mxu2  ;;  %v169_v53 = vpop.f32.mrf.mxu3 }
  0x9a   :  { %v261_v54 = vadd.f32 %v441_v24, %v241_v47  ;;  %v250_v55 = vadd.f32 %v441_v24, %v230_v48  ;;  %v160_v56 = vadd.f32 %v429_v16, %v159_v52  ;;  %v170_v57 = vadd.f32 %v429_v16, %v169_v53  ;;  %v142_v58 = vpop.f32.mrf.mxu0  ;;  %v152_v59 = vpop.f32.mrf.mxu1 }
  0x9b   :  { %274 = vst.msk [vmem:[%s558_s5 + $0x40] sm:$0xff] %vm265_vm5, %v257_v50  ;;  %v254_v60 = vadd.f32 %v441_v24, %v234_v51  ;;  %v143_v61 = vadd.f32 %v429_v16, %v142_v58  ;;  %v153_v62 = vadd.f32 %v429_v16, %v152_v59 }
  0x9c   :  { %278 = vst.msk [vmem:[%s558_s5 + $0x60] sm:$0xff] %vm265_vm5, %v261_v54  ;;  %vm186_vm10 = vcmp.gt.f32.partialorder %v160_v56, 0.0  ;;  %v202_v63 = vmul.f32 0.2, %v160_v56  ;;  %vm190_vm11 = vcmp.gt.f32.partialorder %v170_v57, 0.0 }
  0x9d   :  { %267 = vst.msk [vmem:[%s558_s5 + $0x8] sm:$0xff] %vm265_vm5, %v250_v55  ;;  %v206_v0 = vmul.f32 0.2, %v170_v57  ;;  %vm179_vm12 = vcmp.gt.f32.partialorder %v143_v61, 0.0  ;;  %v195_v1 = vmul.f32 0.2, %v143_v61 }
  0x9e   :  { %271 = vst.msk [vmem:[%s558_s5 + $0x28] sm:$0xff] %vm265_vm5, %v254_v60  ;;  %v218_v2 = vsel %vm186_vm10, %v160_v56, %v202_v63  ;;  %vm183_vm13 = vcmp.gt.f32.partialorder %v153_v62, 0.0  ;;  %v199_v3 = vmul.f32 0.2, %v153_v62 }
  0x9f   :  { %v238_v4 = vmul.f32 %v436_v21, %v218_v2  ;;  %v222_v5 = vsel %vm190_vm11, %v170_v57, %v206_v0  ;;  %v211_v6 = vsel %vm179_vm12, %v143_v61, %v195_v1 }
  0xa0   :  { %v242_v7 = vmul.f32 %v436_v21, %v222_v5  ;;  %v231_v8 = vmul.f32 %v436_v21, %v211_v6  ;;  %v215_v9 = vsel %vm183_vm13, %v153_v62, %v199_v3 }
  0xa1   :  { %v258_v10 = vadd.f32 %v441_v24, %v238_v4  ;;  %v235_v11 = vmul.f32 %v436_v21, %v215_v9  ;;  %v162_v12 = vpop.f32.mrf.mxu2  ;;  %v172_v13 = vpop.f32.mrf.mxu3 }
  0xa2   :  { %v262_v14 = vadd.f32 %v441_v24, %v242_v7  ;;  %v251_v15 = vadd.f32 %v441_v24, %v231_v8  ;;  %v163_v17 = vadd.f32 %v429_v16, %v162_v12  ;;  %v173_v18 = vadd.f32 %v429_v16, %v172_v13  ;;  %v144_v19 = vpop.f32.mrf.mxu0  ;;  %v154_v20 = vpop.f32.mrf.mxu1 }
  0xa3   :  { %275 = vst.msk [vmem:[%s558_s5 + $0x48] sm:$0xff] %vm265_vm5, %v258_v10  ;;  %v255_v22 = vadd.f32 %v441_v24, %v235_v11  ;;  %v145_v23 = vadd.f32 %v429_v16, %v144_v19  ;;  %v155_v25 = vadd.f32 %v429_v16, %v154_v20 }
  0xa4   :  { %279 = vst.msk [vmem:[%s558_s5 + $0x68] sm:$0xff] %vm265_vm5, %v262_v14  ;;  %vm187_vm14 = vcmp.gt.f32.partialorder %v163_v17, 0.0  ;;  %v203_v26 = vmul.f32 0.2, %v163_v17  ;;  %vm191_vm15 = vcmp.gt.f32.partialorder %v173_v18, 0.0 }
  0xa5   :  { %268 = vst.msk [vmem:[%s558_s5 + $0x10] sm:$0xff] %vm265_vm5, %v251_v15  ;;  %v207_v27 = vmul.f32 0.2, %v173_v18  ;;  %vm180_vm0 = vcmp.gt.f32.partialorder %v145_v23, 0.0  ;;  %v196_v28 = vmul.f32 0.2, %v145_v23 }
  0xa6   :  { %272 = vst.msk [vmem:[%s558_s5 + $0x30] sm:$0xff] %vm265_vm5, %v255_v22  ;;  %v219_v29 = vsel %vm187_vm14, %v163_v17, %v203_v26  ;;  %vm184_vm1 = vcmp.gt.f32.partialorder %v155_v25, 0.0  ;;  %v200_v30 = vmul.f32 0.2, %v155_v25 }
  0xa7   :  { %v239_v31 = vmul.f32 %v436_v21, %v219_v29  ;;  %v223_v32 = vsel %vm191_vm15, %v173_v18, %v207_v27  ;;  %v212_v33 = vsel %vm180_vm0, %v145_v23, %v196_v28 }
  0xa8   :  { %v243_v34 = vmul.f32 %v436_v21, %v223_v32  ;;  %v232_v35 = vmul.f32 %v436_v21, %v212_v33  ;;  %v216_v36 = vsel %vm184_vm1, %v155_v25, %v200_v30 }
  0xa9   :  { %v259_v37 = vadd.f32 %v441_v24, %v239_v31  ;;  %v236_v38 = vmul.f32 %v436_v21, %v216_v36  ;;  %v164_v39 = vpop.f32.mrf.mxu2  ;;  %v174_v40 = vpop.f32.mrf.mxu3 }
  0xaa   :  { %v263_v41 = vadd.f32 %v441_v24, %v243_v34  ;;  %v252_v42 = vadd.f32 %v441_v24, %v232_v35  ;;  %v165_v43 = vadd.f32 %v429_v16, %v164_v39  ;;  %v175_v44 = vadd.f32 %v429_v16, %v174_v40 }
  0xab   :  { %276 = vst.msk [vmem:[%s558_s5 + $0x50] sm:$0xff] %vm265_vm5, %v259_v37  ;;  %v256_v45 = vadd.f32 %v441_v24, %v236_v38 }
  0xac   :  { %280 = vst.msk [vmem:[%s558_s5 + $0x70] sm:$0xff] %vm265_vm5, %v263_v41  ;;  %vm188_vm2 = vcmp.gt.f32.partialorder %v165_v43, 0.0  ;;  %v204_v46 = vmul.f32 0.2, %v165_v43  ;;  %vm192_vm3 = vcmp.gt.f32.partialorder %v175_v44, 0.0 }
  0xad   :  { %269 = vst.msk [vmem:[%s558_s5 + $0x18] sm:$0xff] %vm265_vm5, %v252_v42  ;;  %v208_v16 = vmul.f32 0.2, %v175_v44 }
  0xae   :  { %273 = vst.msk [vmem:[%s558_s5 + $0x38] sm:$0xff] %vm265_vm5, %v256_v45  ;;  %v220_v47 = vsel %vm188_vm2, %v165_v43, %v204_v46 }
  0xaf   :  { %v240_v48 = vmul.f32 %v436_v21, %v220_v47  ;;  %v224_v49 = vsel %vm192_vm3, %v175_v44, %v208_v16 }
  0xb0   :  { %v244_v50 = vmul.f32 %v436_v21, %v224_v49 }
  0xb1   :  { %v260_v51 = vadd.f32 %v441_v24, %v240_v48 }
  0xb2   :  { %v264_v52 = vadd.f32 %v441_v24, %v244_v50 }
  0xb3   :  { %277 = vst.msk [vmem:[%s558_s5 + $0x58] sm:$0xff] %vm265_vm5, %v260_v51 }
  0xb4   :  { %281 = vst.msk [vmem:[%s558_s5 + $0x78] sm:$0xff] %vm265_vm5, %v264_v52 }

// kernel: discriminator_forward.7
= control target key start
LH: loop header
LB: loop body
LE: loop exit
PB: predicated region body
PF: predicated region fallthrough
CT: control target
= control target key end

     0   :  { %vm181_vm0 = vcmask 261120   ;;  %vm237_vm2 = vcmask 523264   ;;  %s439_s1 = inlined_call_operand.vmem [shape: bf16[288,64], index: 1, kind: input, shape index: {}]   ;;  %s440_s0 = inlined_call_operand.vmem [shape: bf16[8,288], index: 0, kind: input, shape index: {}]   ;;  %s441_s2 = inlined_call_operand.vmem [shape: f32[1,64], index: 2, kind: input, shape index: {}]   ;;  %s442_s3 = inlined_call_operand.vmem [shape: f32[1,64], index: 3, kind: input, shape index: {}]   ;;  %s443_s4 = inlined_call_operand.vmem [shape: f32[1,64], index: 4, kind: input, shape index: {}]   ;;  %s444_s5 = inlined_call_operand.vmem [shape: f32[8,64], index: 5, kind: output, shape index: {}]  }
   0x1   :  { %v323_v0 = vld [vmem:[%s439_s1 + $0x38] sm:$0xff]  ;;  %v322_v2 = vld [vmem:[%s439_s1 + $0x30] sm:$0xff]  ;;  %v333_v4 = vld [vmem:[%s439_s1 + $0x88] sm:$0xff] }
   0x2   :  { %v331_v1 = vld [vmem:[%s439_s1 + $0x78] sm:$0xff]  ;;  %185 = vmatpush.bf16.msra.mxu0 %v323_v0  ;;  %v330_v3 = vld [vmem:[%s439_s1 + $0x70] sm:$0xff]  ;;  %217 = vmatpush.bf16.msra.mxu2 %v333_v4  ;;  %v332_v5 = vld [vmem:[%s439_s1 + $0x80] sm:$0xff] }
   0x3   :  { %198 = vmatpush.bf16.msra.mxu1 %v331_v1  ;;  %v22_v6 = vld [vmem:[%s440_s0 + $0x8] sm:$0xf]  ;;  %v320_v11 = vld [vmem:[%s439_s1 + $0x20] sm:$0xff]  ;;  %v319_v13 = vld [vmem:[%s439_s1 + $0x18] sm:$0xff] }
   0x4   :  { %v67_v7 = vunpack.c.l.b16 %v22_v6  ;;  %v321_v8 = vld [vmem:[%s439_s1 + $0x28] sm:$0xff]  ;;  %v328_v12 = vld [vmem:[%s439_s1 + $0x60] sm:$0xff]  ;;  %v327_v14 = vld [vmem:[%s439_s1 + $0x58] sm:$0xff] }
   0x5   :  { %v329_v9 = vld [vmem:[%s439_s1 + $0x68] sm:$0xff]  ;;  %v318_v15 = vld [vmem:[%s439_s1 + $0x10] sm:$0xff]  ;;  %v21_v19 = vld [vmem:[%s440_s0] sm:$0xff] }
   0x6   :  { %186 = vmatpush.bf16.msra.mxu0 %v322_v2  ;;  %v70_v10 = vpack.c.b16 %v67_v7, %v67_v7  ;;  %218 = vmatpush.bf16.msra.mxu2 %v332_v5  ;;  %v326_v16 = vld [vmem:[%s439_s1 + $0x50] sm:$0xff]  ;;  %v317_v17 = vld [vmem:[%s439_s1 + $0x8] sm:$0xff]  ;;  %v65_v20 = vunpack.c.l.b16 %v21_v19  ;;  %v66_v21 = vunpack.c.h.b16 %v21_v19  ;;  %v316_v22 = vld [vmem:[%s439_s1] sm:$0xff] }
   0x7   :  { %199 = vmatpush.bf16.msra.mxu1 %v330_v3  ;;  %v325_v18 = vld [vmem:[%s439_s1 + $0x48] sm:$0xff]  ;;  %v324_v23 = vld [vmem:[%s439_s1 + $0x40] sm:$0xff] }
   0x8   :  { %v68_v24 = vpack.c.b16 %v65_v20, %v65_v20  ;;  %v69_v25 = vpack.c.b16 %v66_v21, %v66_v21  ;;  %v334_v28 = vld [vmem:[%s441_s2] ss:$0 sm:$0xff] }
   0x9   :  { %315 = vmatmul.msk.bf16.vlgmr.msra.gmra.mxu2 %vm181_vm0, %v70_v10  ;;  %v335_v34 = vld [vmem:[%s442_s3] ss:$0 sm:$0xff] }
   0xa   :  { %187 = vmatpush.bf16.msra.mxu0 %v321_v8  ;;  %v336_v36 = vld [vmem:[%s443_s4] ss:$0 sm:$0xff] }
   0xb   :  { %200 = vmatpush.bf16.msra.mxu1 %v329_v9 }
   0xe   :  { %188 = vmatpush.bf16.msra.mxu0 %v320_v11 }
   0xf   :  { %201 = vmatpush.bf16.msra.mxu1 %v328_v12 }
  0x12   :  { %189 = vmatpush.bf16.msra.mxu0 %v319_v13 }
  0x13   :  { %202 = vmatpush.bf16.msra.mxu1 %v327_v14 }
  0x16   :  { %190 = vmatpush.bf16.msra.mxu0 %v318_v15 }
  0x17   :  { %203 = vmatpush.bf16.msra.mxu1 %v326_v16 }
  0x1a   :  { %191 = vmatpush.bf16.msra.mxu0 %v317_v17 }
  0x1b   :  { %204 = vmatpush.bf16.msra.mxu1 %v325_v18 }
  0x1e   :  { %192 = vmatpush.bf16.msra.mxu0 %v316_v22 }
  0x1f   :  { %205 = vmatpush.bf16.msra.mxu1 %v324_v23 }
  0x21   :  { %193 = vmatmul.bf16.vlgmr.msra.gmra.mxu0 %v68_v24 }
  0x22   :  { %206 = vmatmul.bf16.vlgmr.msra.gmra.mxu1 %v69_v25 }
  0x8c   :  { %v220_v26 = vpop.f32.mrf.mxu2 }
  0x94   :  { %v222_v27 = vpop.f32.mrf.mxu2 }
  0x9e   :  { %v194_v29 = vpop.f32.mrf.mxu0 }
  0x9f   :  { %v207_v30 = vpop.f32.mrf.mxu1  ;;  %v195_v31 = vadd.f32 %v334_v28, %v194_v29 }
  0xa1   :  { %v208_v32 = vadd.f32 %v207_v30, %v195_v31 }
  0xa3   :  { %v221_v33 = vadd.f32 %v220_v26, %v208_v32 }
  0xa5   :  { %vm224_vm1 = vcmp.gt.f32.partialorder %v221_v33, 0.0  ;;  %v225_v35 = vmul.f32 0.2, %v221_v33 }
  0xa6   :  { %v196_v37 = vpop.f32.mrf.mxu0 }
  0xa7   :  { %v209_v38 = vpop.f32.mrf.mxu1  ;;  %v226_v39 = vsel %vm224_vm1, %v221_v33, %v225_v35 }
  0xa8   :  { %v231_v40 = vmul.f32 %v335_v34, %v226_v39 }
  0xaa   :  { %v236_v41 = vadd.f32 %v336_v36, %v231_v40 }
  0xac   :  { %238 = vst.msk [vmem:[%s444_s5] sm:$0xff] %vm237_vm2, %v236_v41 }

// kernel: discriminator_forward.8
= control target key start
LH: loop header
LB: loop body
LE: loop exit
PB: predicated region body
PF: predicated region fallthrough
CT: control target
= control target key end

     0   :  { %vm333_vm0 = vcmask 523264   ;;  %s763_s1 = inlined_call_operand.vmem [shape: bf16[576,128], index: 1, kind: input, shape index: {}]   ;;  %s764_s2 = inlined_call_operand.vmem [shape: f32[1,128], index: 2, kind: input, shape index: {}]   ;;  %s765_s0 = inlined_call_operand.vmem [shape: bf16[8,576], index: 0, kind: input, shape index: {}]   ;;  %s766_s3 = inlined_call_operand.vmem [shape: f32[1,128], index: 3, kind: input, shape index: {}]   ;;  %s767_s4 = inlined_call_operand.vmem [shape: f32[1,128], index: 4, kind: input, shape index: {}]   ;;  %s768_s5 = inlined_call_operand.vmem [shape: f32[8,128], index: 5, kind: output, shape index: {}]  }
   0x1   :  { %v572_v0 = vld [vmem:[%s763_s1 + $0x38] sm:$0xff]  ;;  %v571_v4 = vld [vmem:[%s763_s1 + $0x30] sm:$0xff]  ;;  %v570_v8 = vld [vmem:[%s763_s1 + $0x28] sm:$0xff] }
   0x2   :  { %v588_v1 = vld [vmem:[%s763_s1 + $0xb8] sm:$0xff]  ;;  %337 = vmatpush.bf16.msra.mxu0 %v572_v0  ;;  %v587_v5 = vld [vmem:[%s763_s1 + $0xb0] sm:$0xff]  ;;  %v586_v9 = vld [vmem:[%s763_s1 + $0xa8] sm:$0xff] }
   0x3   :  { %v596_v2 = vld [vmem:[%s763_s1 + $0xf8] sm:$0xff]  ;;  %363 = vmatpush.bf16.msra.mxu2 %v588_v1  ;;  %v595_v6 = vld [vmem:[%s763_s1 + $0xf0] sm:$0xff]  ;;  %v594_v10 = vld [vmem:[%s763_s1 + $0xe8] sm:$0xff] }
   0x4   :  { %v580_v3 = vld [vmem:[%s763_s1 + $0x78] sm:$0xff]  ;;  %376 = vmatpush.bf16.msra.mxu3 %v596_v2  ;;  %v579_v7 = vld [vmem:[%s763_s1 + $0x70] sm:$0xff]  ;;  %v578_v11 = vld [vmem:[%s763_s1 + $0x68] sm:$0xff] }
   0x5   :  { %350 = vmatpush.bf16.msra.mxu1 %v580_v3  ;;  %v569_v12 = vld [vmem:[%s763_s1 + $0x20] sm:$0xff]  ;;  %v568_v16 = vld [vmem:[%s763_s1 + $0x18] sm:$0xff]  ;;  %v567_v20 = vld [vmem:[%s763_s1 + $0x10] sm:$0xff] }
   0x6   :  { %338 = vmatpush.bf16.msra.mxu0 %v571_v4  ;;  %v585_v13 = vld [vmem:[%s763_s1 + $0xa0] sm:$0xff]  ;;  %v584_v17 = vld [vmem:[%s763_s1 + $0x98] sm:$0xff]  ;;  %v583_v21 = vld [vmem:[%s763_s1 + $0x90] sm:$0xff] }
   0x7   :  { %364 = vmatpush.bf16.msra.mxu2 %v587_v5  ;;  %v593_v14 = vld [vmem:[%s763_s1 + $0xe0] sm:$0xff]  ;;  %v592_v18 = vld [vmem:[%s763_s1 + $0xd8] sm:$0xff]  ;;  %v591_v22 = vld [vmem:[%s763_s1 + $0xd0] sm:$0xff] }
   0x8   :  { %377 = vmatpush.bf16.msra.mxu3 %v595_v6  ;;  %v577_v15 = vld [vmem:[%s763_s1 + $0x60] sm:$0xff]  ;;  %v576_v19 = vld [vmem:[%s763_s1 + $0x58] sm:$0xff]  ;;  %v575_v23 = vld [vmem:[%s763_s1 + $0x50] sm:$0xff] }
   0x9   :  { %351 = vmatpush.bf16.msra.mxu1 %v579_v7  ;;  %v566_v24 = vld [vmem:[%s763_s1 + $0x8] sm:$0xff]  ;;  %v21_v26 = vld [vmem:[%s765_s0] sm:$0xff]  ;;  %v600_v38 = vld [vmem:[%s763_s1 + $0x118] sm:$0xff] }
   0xa   :  { %339 = vmatpush.bf16.msra.mxu0 %v570_v8  ;;  %v582_v25 = vld [vmem:[%s763_s1 + $0x88] sm:$0xff]  ;;  %v103_v30 = vunpack.c.l.b16 %v21_v26  ;;  %v565_v32 = vld [vmem:[%s763_s1] sm:$0xff]  ;;  %v104_v35 = vunpack.c.h.b16 %v21_v26  ;;  %v599_v43 = vld [vmem:[%s763_s1 + $0x110] sm:$0xff] }
   0xb   :  { %365 = vmatpush.bf16.msra.mxu2 %v586_v9  ;;  %v22_v27 = vld [vmem:[%s765_s0 + $0x8] sm:$0xff]  ;;  %v581_v33 = vld [vmem:[%s763_s1 + $0x80] sm:$0xff]  ;;  %v23_v45 = vld [vmem:[%s765_s0 + $0x10] sm:$0xf] }
   0xc   :  { %378 = vmatpush.bf16.msra.mxu3 %v594_v10  ;;  %v590_v28 = vld [vmem:[%s763_s1 + $0xc8] sm:$0xff]  ;;  %v105_v31 = vunpack.c.l.b16 %v22_v27  ;;  %v106_v34 = vunpack.c.h.b16 %v22_v27  ;;  %v589_v36 = vld [vmem:[%s763_s1 + $0xc0] sm:$0xff]  ;;  %v108_v39 = vpack.c.b16 %v103_v30, %v103_v30  ;;  %v109_v42 = vpack.c.b16 %v104_v35, %v104_v35 }
   0xd   :  { %352 = vmatpush.bf16.msra.mxu1 %v578_v11  ;;  %v574_v29 = vld [vmem:[%s763_s1 + $0x48] sm:$0xff]  ;;  %v573_v37 = vld [vmem:[%s763_s1 + $0x40] sm:$0xff]  ;;  %v107_v47 = vunpack.c.l.b16 %v23_v45 }
   0xe   :  { %340 = vmatpush.bf16.msra.mxu0 %v569_v12  ;;  %v110_v40 = vpack.c.b16 %v105_v31, %v105_v31  ;;  %v111_v41 = vpack.c.b16 %v106_v34, %v106_v34  ;;  %v598_v44 = vld [vmem:[%s763_s1 + $0x108] sm:$0xff]  ;;  %v597_v46 = vld [vmem:[%s763_s1 + $0x100] sm:$0xff] }
   0xf   :  { %366 = vmatpush.bf16.msra.mxu2 %v585_v13  ;;  %v112_v48 = vpack.c.b16 %v107_v47, %v107_v47  ;;  %v601_v50 = vld [vmem:[%s764_s2] ss:$0 sm:$0xff] }
  0x10   :  { %379 = vmatpush.bf16.msra.mxu3 %v593_v14  ;;  %v602_v0 = vld [vmem:[%s766_s3] ss:$0 sm:$0xff] }
  0x11   :  { %353 = vmatpush.bf16.msra.mxu1 %v577_v15  ;;  %v603_v2 = vld [vmem:[%s767_s4] ss:$0 sm:$0xff] }
  0x12   :  { %341 = vmatpush.bf16.msra.mxu0 %v568_v16 }
  0x13   :  { %367 = vmatpush.bf16.msra.mxu2 %v584_v17 }
  0x14   :  { %380 = vmatpush.bf16.msra.mxu3 %v592_v18 }
  0x15   :  { %354 = vmatpush.bf16.msra.mxu1 %v576_v19 }
  0x16   :  { %342 = vmatpush.bf16.msra.mxu0 %v567_v20 }
  0x17   :  { %368 = vmatpush.bf16.msra.mxu2 %v583_v21 }
  0x18   :  { %381 = vmatpush.bf16.msra.mxu3 %v591_v22 }
  0x19   :  { %355 = vmatpush.bf16.msra.mxu1 %v575_v23 }
  0x1a   :  { %343 = vmatpush.bf16.msra.mxu0 %v566_v24 }
  0x1b   :  { %369 = vmatpush.bf16.msra.mxu2 %v582_v25 }
  0x1c   :  { %382 = vmatpush.bf16.msra.mxu3 %v590_v28 }
  0x1d   :  { %356 = vmatpush.bf16.msra.mxu1 %v574_v29 }
  0x1e   :  { %344 = vmatpush.bf16.msra.mxu0 %v565_v32 }
  0x1f   :  { %370 = vmatpush.bf16.msra.mxu2 %v581_v33 }
  0x20   :  { %383 = vmatpush.bf16.msra.mxu3 %v589_v36 }
  0x21   :  { %357 = vmatpush.bf16.msra.mxu1 %v573_v37  ;;  %345 = vmatmul.bf16.vlgmr.msra.gmra.mxu0 %v108_v39 }
  0x22   :  { %393 = vmatpush.bf16.msrb.mxu0 %v600_v38  ;;  %371 = vmatmul.bf16.vlgmr.msra.gmra.mxu2 %v110_v40 }
  0x23   :  { %384 = vmatmul.bf16.vlgmr.msra.gmra.mxu3 %v111_v41 }
  0x24   :  { %358 = vmatmul.bf16.vlgmr.msra.gmra.mxu1 %v109_v42 }
  0x26   :  { %394 = vmatpush.bf16.msrb.mxu0 %v599_v43 }
  0x2a   :  { %395 = vmatpush.bf16.msrb.mxu0 %v598_v44 }
  0x2e   :  { %396 = vmatpush.bf16.msrb.mxu0 %v597_v46 }
  0x31   :  { %564 = vmatmul.msk.bf16.vlgmr.msrb.gmra.mxu0 %vm333_vm0, %v112_v48 }
  0x9e   :  { %v346_v49 = vpop.f32.mrf.mxu0 }
  0x9f   :  { %v347_v52 = vadd.f32 %v601_v50, %v346_v49 }
  0xa1   :  { %v359_v51 = vpop.f32.mrf.mxu1 }
  0xa2   :  { %v360_v56 = vadd.f32 %v359_v51, %v347_v52 }
  0xa5   :  { %v372_v53 = vpop.f32.mrf.mxu2 }
  0xa6   :  { %v385_v54 = vpop.f32.mrf.mxu3  ;;  %v348_v55 = vpop.f32.mrf.mxu0  ;;  %v373_v58 = vadd.f32 %v372_v53, %v360_v56 }
  0xa8   :  { %v386_v60 = vadd.f32 %v385_v54, %v373_v58 }
  0xa9   :  { %v361_v57 = vpop.f32.mrf.mxu1 }
  0xad   :  { %v374_v59 = vpop.f32.mrf.mxu2 }
  0xae   :  { %v387_v61 = vpop.f32.mrf.mxu3  ;;  %v398_v62 = vpop.f32.mrf.mxu0 }
  0xaf   :  { %v399_v63 = vadd.f32 %v398_v62, %v386_v60 }
  0xb1   :  { %vm402_vm1 = vcmp.gt.f32.partialorder %v399_v63, 0.0  ;;  %v403_v1 = vmul.f32 0.2, %v399_v63 }
  0xb3   :  { %v404_v3 = vsel %vm402_vm1, %v399_v63, %v403_v1 }
  0xb4   :  { %v409_v4 = vmul.f32 %v602_v0, %v404_v3 }
  0xb6   :  { %v414_v5 = vadd.f32 %v603_v2, %v409_v4  ;;  %v400_v6 = vpop.f32.mrf.mxu0 }
  0xb8   :  { %415 = vst [vmem:[%s768_s5] sm:$0xff] %v414_v5 }

// kernel: discriminator_forward.9
= control target key start
LH: loop header
LB: loop body
LE: loop exit
PB: predicated region body
PF: predicated region fallthrough
CT: control target
= control target key end

     0   :  { %vm76_vm3 = vcmask 1024   ;;  %s165_s1 = inlined_call_operand.vmem [shape: f32[128,1], index: 1, kind: input, shape index: {}]   ;;  %s166_s2 = inlined_call_operand.<no memory space> [shape: f32[1,1], index: 2, kind: input, shape index: {}]   ;;  %s167_s0 = inlined_call_operand.vmem [shape: f32[2,128], index: 0, kind: input, shape index: {}]   ;;  %s168_s3 = inlined_call_operand.vmem [shape: f32[2,1], index: 3, kind: output, shape index: {}]  }
   0x1   :  { %v32_v0 = vld [vmem:[%s165_s1 + $0x78] sm:$0xff]  ;;  %v31_v1 = vld [vmem:[%s165_s1 + $0x70] sm:$0xff]  ;;  %v8_v2 = vstv %s166_s2  ;;  %v30_v3 = vld [vmem:[%s165_s1 + $0x68] sm:$0xff] }
   0x2   :  { %37 = vmatpush.msra.mxu0 %v32_v0  ;;  %9 = vst [vmem:[#allocation2] sm:$0x1] %v8_v2  ;;  %v29_v4 = vld [vmem:[%s165_s1 + $0x60] sm:$0xff]  ;;  %v28_v5 = vld [vmem:[%s165_s1 + $0x58] sm:$0xff]  ;;  %v27_v6 = vld [vmem:[%s165_s1 + $0x50] sm:$0xff] }
   0x3   :  { %v26_v7 = vld [vmem:[%s165_s1 + $0x48] sm:$0xff]  ;;  %v25_v8 = vld [vmem:[%s165_s1 + $0x40] sm:$0xff]  ;;  %v24_v9 = vld [vmem:[%s165_s1 + $0x38] sm:$0xff] }
   0x4   :  { %38 = vmatpush.msra.mxu0 %v31_v1  ;;  %v23_v10 = vld [vmem:[%s165_s1 + $0x30] sm:$0xff]  ;;  %v22_v11 = vld [vmem:[%s165_s1 + $0x28] sm:$0xff]  ;;  %v21_v12 = vld [vmem:[%s165_s1 + $0x20] sm:$0xff] }
   0x5   :  { %v20_v13 = vld [vmem:[%s165_s1 + $0x18] sm:$0xff]  ;;  %v19_v14 = vld [vmem:[%s165_s1 + $0x10] sm:$0xff]  ;;  %v18_v15 = vld [vmem:[%s165_s1 + $0x8] sm:$0xff] }
   0x6   :  { %39 = vmatpush.msra.mxu0 %v30_v3  ;;  %v17_v16 = vld [vmem:[%s165_s1] sm:$0xff] }
   0x7   :  { %v16_v17 = vld [vmem:[%s167_s0] sm:$0x3] }
   0x8   :  { %40 = vmatpush.msra.mxu0 %v29_v4 }
   0x9   :  { %v83_v18 = vld [vmem:[#allocation2] ss:$0 sm:$0xff] }
   0xa   :  { %41 = vmatpush.msra.mxu0 %v28_v5 }
   0xc   :  { %42 = vmatpush.msra.mxu0 %v27_v6 }
   0xe   :  { %43 = vmatpush.msra.mxu0 %v26_v7 }
  0x10   :  { %44 = vmatpush.msra.mxu0 %v25_v8 }
  0x12   :  { %45 = vmatpush.msra.mxu0 %v24_v9 }
  0x14   :  { %46 = vmatpush.msra.mxu0 %v23_v10 }
  0x16   :  { %47 = vmatpush.msra.mxu0 %v22_v11 }
  0x18   :  { %48 = vmatpush.msra.mxu0 %v21_v12 }
  0x1a   :  { %49 = vmatpush.msra.mxu0 %v20_v13 }
  0x1c   :  { %50 = vmatpush.msra.mxu0 %v19_v14 }
  0x1e   :  { %51 = vmatpush.msra.mxu0 %v18_v15 }
  0x20   :  { %52 = vmatpush.msra.mxu0 %v17_v16 }
  0x21   :  { %53 = vmatmul.f32.vlgmr.msra.gmra.mxu0 %v16_v17 }
  0x9e   :  { %v54_v19 = vpop.f32.mrf.mxu0 }
  0x9f   :  { %v55_v20 = vadd.f32 %v83_v18, %v54_v19 }
  0xa1   :  { %v82_v21 = vmul.f32 -1.442695, %v55_v20 }
  0xa3   :  { %84 = vpow2.f32 %v82_v21 }
  0xa9   :  { %v85_v22 = vpop.eup %84 }
  0xaa   :  { %v60_v23 = vadd.f32 1.0, %v85_v22 }
  0xac   :  { %86 = vrcp.f32 %v60_v23  ;;  %v72_v27 = vand.u32 2147483648, %v60_v23  ;;  %v70_v29 = vand.u32 2147483647, %v60_v23  ;;  %vm66_vm1 = vweird.f32 %v60_v23 }
  0xae   :  { %v73_v31 = vor.u32 1.1754944e-38, %v72_v27  ;;  %vm71_vm4 = vcmp.eq.f32.partialorder %v70_v29, 8.507059e+37 }
  0xb2   :  { %v87_v24 = vpop.eup %86 }
  0xb3   :  { %v62_v25 = vmul.f32 %v87_v24, %v60_v23  ;;  %vm67_vm0 = vweird.f32 %v87_v24 }
  0xb4   :  { %vm68_vm2 = vmor %vm66_vm1, %vm67_vm0 }
  0xb5   :  { %v63_v26 = vsub.f32 1.0, %v62_v25 }
  0xb7   :  { %v64_v28 = vmul.f32 %v87_v24, %v63_v26 }
  0xb9   :  { %v65_v30 = vadd.f32 %v87_v24, %v64_v28 }
  0xbb   :  { %v69_v32 = vsel %vm68_vm2, %v87_v24, %v65_v30 }
  0xbc   :  { %v74_v33 = vsel %vm71_vm4, %v73_v31, %v69_v32 }
  0xbd   :  { %77 = vst.msk [vmem:[%s168_s3] sm:$0x3] %vm76_vm3, %v74_v33 }

</bundles_post_ra>
